<compile_context>
chip_gen: v7x
topology: tpu7x:2x2x1
jax: 0.10.0
libtpu: 0.0.40
codegen_flags: <defaults>
</compile_context>

<pallas_src>
import math
import functools

import jax
import jax.numpy as jnp
from jax.experimental import pallas as pl
from jax.experimental.pallas import tpu as pltpu


def _lstm_kernel(x_ref, w_ref, u_ref, b_ref, h0_ref, c0_ref,
                 hseq_ref, hT_ref, cT_ref, *, seq_len):
    # x_ref   : (S*B, In)   flattened time-major input
    # w_ref   : (In, 4H)    concatenated [i, f, g, o] input weights
    # u_ref   : (H, 4H)     concatenated recurrent weights
    # b_ref   : (1, 4H)     concatenated bias
    # h0/c0   : (B, H)
    # hseq_ref: (B, S*H)    lane-dense per-timestep hidden states
    # hT/cT   : (B, H)      final states
    B, H = h0_ref.shape

    # Hoisted, non-recurrent half: ONE (S*B, In) @ (In, 4H) MXU matmul + bias.
    # Kept vreg-resident (no VMEM scratch round trip).
    zx = jnp.dot(x_ref[...], w_ref[...],
                 preferred_element_type=jnp.float32) + b_ref[...]     # (S*B, 4H)

    u = u_ref[...]                                                    # (H, 4H)
    h = h0_ref[...]                                                   # (B, H)
    c = c0_ref[...]                                                   # (B, H)

    # Static unroll over time: all slice offsets below are compile-time
    # constants, so zx never touches VMEM and hseq stores use static offsets.
    for t in range(seq_len):
        zx_t = zx[t * B:(t + 1) * B, :]                               # (B, 4H)

        # Recurrent half on the serial h->h chain (f32 operands, f32 acc).
        z = zx_t + jnp.dot(h, u, preferred_element_type=jnp.float32)  # (B, 4H)

        # One full-vreg sigmoid (i/f/o quadrants used); tanh only on g quadrant.
        sg = jax.nn.sigmoid(z)
        i_t = sg[:, 0 * H:1 * H]
        f_t = sg[:, 1 * H:2 * H]
        o_t = sg[:, 3 * H:4 * H]
        g_t = jnp.tanh(z[:, 2 * H:3 * H])

        c = f_t * c + i_t * g_t
        h = o_t * jnp.tanh(c)

        # Lane slot t of the (B, S*H) output block; single lane-dense HBM
        # writeback happens once at kernel end.
        hseq_ref[:, t * H:(t + 1) * H] = h

    # Final states written exactly once.
    hT_ref[...] = h
    cT_ref[...] = c


@jax.jit
def lstm_from_scratch_forward(x, h0, c0, W, U, b):
    """x: (S, B, In); h0/c0: (B, H); W: (In, 4H); U: (H, 4H); b: (4H,)."""
    S, B, In = x.shape
    H = h0.shape[-1]
    x2d = x.reshape(S * B, In)          # flatten time for the hoisted matmul
    b2 = b.reshape(1, 4 * H)

    kernel = functools.partial(_lstm_kernel, seq_len=S)

    # VMEM scaling note: x (S*B,In) and hseq (B,S*H) are whole-array blocks.
    # If S*B*H grows large (esp. on v7x's 64 MiB VMEM), block the time axis on
    # the grid ('arbitrary'), carry h/c in persistent VMEM scratch, and compute
    # x@W per time-block so BlockSpec auto-pipelines the x-in / hseq-out DMAs.
    hseq_flat, hT, cT = pl.pallas_call(
        kernel,
        out_shape=(
            jax.ShapeDtypeStruct((B, S * H), jnp.float32),   # lane-dense hidden_seq
            jax.ShapeDtypeStruct((B, H), jnp.float32),       # final h
            jax.ShapeDtypeStruct((B, H), jnp.float32),       # final c
        ),
        grid_spec=pltpu.PrefetchScalarGridSpec(
            num_scalar_prefetch=0,
            grid=(1,),                                          # single invocation
            in_specs=[
                pl.BlockSpec((S * B, In), lambda i: (0, 0)),    # x (flattened)
                pl.BlockSpec((In, 4 * H), lambda i: (0, 0)),    # W (concat gates)
                pl.BlockSpec((H, 4 * H), lambda i: (0, 0)),     # U (concat gates)
                pl.BlockSpec((1, 4 * H), lambda i: (0, 0)),     # b
                pl.BlockSpec((B, H), lambda i: (0, 0)),         # h0
                pl.BlockSpec((B, H), lambda i: (0, 0)),         # c0
            ],
            out_specs=[
                pl.BlockSpec((B, S * H), lambda i: (0, 0)),     # hidden_seq (B, S*H)
                pl.BlockSpec((B, H), lambda i: (0, 0)),         # final h
                pl.BlockSpec((B, H), lambda i: (0, 0)),         # final c
            ],
        ),
        compiler_params=pltpu.CompilerParams(
            dimension_semantics=("arbitrary",)),                # sequential recurrence
    )(x2d, W, U, b2, h0, c0)

    # Row-major (B, S*H) is bit-identical to (B, S, H): free reshape, no
    # transpose — matches PyTorch's hidden_seq.transpose(0, 1).
    return hseq_flat.reshape(B, S, H), (hT, cT)


def _reference_lstm(x, h0, c0, W, U, b):
    """Pure-JAX reference (lax.scan) matching the PyTorch forward."""
    H = h0.shape[-1]

    def step(carry, x_t):
        h, c = carry
        z = x_t @ W + h @ U + b
        i = jax.nn.sigmoid(z[:, 0 * H:1 * H])
        f = jax.nn.sigmoid(z[:, 1 * H:2 * H])
        g = jnp.tanh(z[:, 2 * H:3 * H])
        o = jax.nn.sigmoid(z[:, 3 * H:4 * H])
        c = f * c + i * g
        h = o * jnp.tanh(c)
        return (h, c), h

    (hT, cT), hseq = jax.lax.scan(step, (h0, c0), x)
    return jnp.transpose(hseq, (1, 0, 2)), (hT, cT)


if __name__ == "__main__":
    # Small shapes consistent with the module: seq=8, batch=8, input=32, hidden=32.
    S, B, INPUT_SZ, HIDDEN_SZ = 8, 8, 32, 32

    key = jax.random.PRNGKey(0)
    stdv = 1.0 / math.sqrt(HIDDEN_SZ)

    keys = jax.random.split(key, 16)
    # Per-gate params, same shapes as the PyTorch module (gate order i, f, c, o).
    W_i = jax.random.uniform(keys[0], (INPUT_SZ, HIDDEN_SZ), jnp.float32, -stdv, stdv)
    U_i = jax.random.uniform(keys[1], (HIDDEN_SZ, HIDDEN_SZ), jnp.float32, -stdv, stdv)
    b_i = jax.random.uniform(keys[2], (HIDDEN_SZ,), jnp.float32, -stdv, stdv)
    W_f = jax.random.uniform(keys[3], (INPUT_SZ, HIDDEN_SZ), jnp.float32, -stdv, stdv)
    U_f = jax.random.uniform(keys[4], (HIDDEN_SZ, HIDDEN_SZ), jnp.float32, -stdv, stdv)
    b_f = jax.random.uniform(keys[5], (HIDDEN_SZ,), jnp.float32, -stdv, stdv)
    W_c = jax.random.uniform(keys[6], (INPUT_SZ, HIDDEN_SZ), jnp.float32, -stdv, stdv)
    U_c = jax.random.uniform(keys[7], (HIDDEN_SZ, HIDDEN_SZ), jnp.float32, -stdv, stdv)
    b_c = jax.random.uniform(keys[8], (HIDDEN_SZ,), jnp.float32, -stdv, stdv)
    W_o = jax.random.uniform(keys[9], (INPUT_SZ, HIDDEN_SZ), jnp.float32, -stdv, stdv)
    U_o = jax.random.uniform(keys[10], (HIDDEN_SZ, HIDDEN_SZ), jnp.float32, -stdv, stdv)
    b_o = jax.random.uniform(keys[11], (HIDDEN_SZ,), jnp.float32, -stdv, stdv)

    # Concatenate gates [i, f, g(c), o] along the output axis for one MXU matmul.
    W = jnp.concatenate([W_i, W_f, W_c, W_o], axis=1)   # (In, 4H)
    U = jnp.concatenate([U_i, U_f, U_c, U_o], axis=1)   # (H, 4H)
    b = jnp.concatenate([b_i, b_f, b_c, b_o], axis=0)   # (4H,)

    x = jax.random.normal(keys[12], (S, B, INPUT_SZ), jnp.float32)
    h0 = jax.random.normal(keys[13], (B, HIDDEN_SZ), jnp.float32)
    c0 = jax.random.normal(keys[14], (B, HIDDEN_SZ), jnp.float32)

    hidden_seq, (h_t, c_t) = lstm_from_scratch_forward(x, h0, c0, W, U, b)
    jax.block_until_ready((hidden_seq, h_t, c_t))

    # Sanity check against a pure-JAX reference (f32 path).
    ref_seq, (ref_h, ref_c) = _reference_lstm(x, h0, c0, W, U, b)
    assert jnp.allclose(hidden_seq, ref_seq, atol=1e-5, rtol=1e-5)
    assert jnp.allclose(h_t, ref_h, atol=1e-5, rtol=1e-5)
    assert jnp.allclose(c_t, ref_c, atol=1e-5, rtol=1e-5)

    print("KERNEL_OK")
</pallas_src>

<mosaic_0001>
module attributes {stable_mosaic.version = 11 : i64} {
  func.func @_lstm_kernel(%arg0: i32, %arg1: memref<64x32xf32, #tpu.memory_space<vmem>>, %arg2: memref<32x128xf32, #tpu.memory_space<vmem>>, %arg3: memref<32x128xf32, #tpu.memory_space<vmem>>, %arg4: memref<1x128xf32, #tpu.memory_space<vmem>>, %arg5: memref<8x32xf32, #tpu.memory_space<vmem>>, %arg6: memref<8x32xf32, #tpu.memory_space<vmem>>, %arg7: memref<8x256xf32, #tpu.memory_space<vmem>>, %arg8: memref<8x32xf32, #tpu.memory_space<vmem>>, %arg9: memref<8x32xf32, #tpu.memory_space<vmem>>) attributes {dimension_semantics = [#tpu.dimension_semantics<arbitrary>], iteration_bounds = array<i64: 1>, scalar_prefetch = 0 : i64, scratch_operands = 0 : i64, tpu.core_type = #tpu.core_type<tc>, window_params = [{pipeline_mode = #tpu.pipeline_mode<synchronous>, transform_indices = @transform_0, window_bounds = array<i64: 64, 32>}, {pipeline_mode = #tpu.pipeline_mode<synchronous>, transform_indices = @transform_1, window_bounds = array<i64: 32, 128>}, {pipeline_mode = #tpu.pipeline_mode<synchronous>, transform_indices = @transform_2, window_bounds = array<i64: 32, 128>}, {pipeline_mode = #tpu.pipeline_mode<synchronous>, transform_indices = @transform_3, window_bounds = array<i64: 1, 128>}, {pipeline_mode = #tpu.pipeline_mode<synchronous>, transform_indices = @transform_4, window_bounds = array<i64: 8, 32>}, {pipeline_mode = #tpu.pipeline_mode<synchronous>, transform_indices = @transform_5, window_bounds = array<i64: 8, 32>}, {pipeline_mode = #tpu.pipeline_mode<synchronous>, transform_indices = @transform_6, window_bounds = array<i64: 8, 256>}, {pipeline_mode = #tpu.pipeline_mode<synchronous>, transform_indices = @transform_7, window_bounds = array<i64: 8, 32>}, {pipeline_mode = #tpu.pipeline_mode<synchronous>, transform_indices = @transform_8, window_bounds = array<i64: 8, 32>}]} {
    %c0 = arith.constant 0 : index
    %c0_0 = arith.constant 0 : index
    %0 = vector.load %arg1[%c0, %c0_0] : memref<64x32xf32, #tpu.memory_space<vmem>>, vector<64x32xf32>
    %c0_1 = arith.constant 0 : index
    %c0_2 = arith.constant 0 : index
    %1 = vector.load %arg2[%c0_1, %c0_2] : memref<32x128xf32, #tpu.memory_space<vmem>>, vector<32x128xf32>
    %cst = arith.constant dense<0.000000e+00> : vector<64x128xf32>
    %2 = tpu.matmul %0, %1, %cst {dimension_numbers = #tpu.dot_dimension_numbers<[1], [0], [0], [1], [0, 0, 1, 1], [], []>} : vector<64x32xf32>, vector<32x128xf32>, vector<64x128xf32> -> vector<64x128xf32>
    %c0_3 = arith.constant 0 : index
    %c0_4 = arith.constant 0 : index
    %3 = vector.load %arg4[%c0_3, %c0_4] : memref<1x128xf32, #tpu.memory_space<vmem>>, vector<1x128xf32>
    %4 = vector.broadcast %3 : vector<1x128xf32> to vector<64x128xf32>
    %5 = arith.addf %2, %4 : vector<64x128xf32>
    %c0_5 = arith.constant 0 : index
    %c0_6 = arith.constant 0 : index
    %6 = vector.load %arg3[%c0_5, %c0_6] : memref<32x128xf32, #tpu.memory_space<vmem>>, vector<32x128xf32>
    %c0_7 = arith.constant 0 : index
    %c0_8 = arith.constant 0 : index
    %7 = vector.load %arg5[%c0_7, %c0_8] : memref<8x32xf32, #tpu.memory_space<vmem>>, vector<8x32xf32>
    %c0_9 = arith.constant 0 : index
    %c0_10 = arith.constant 0 : index
    %8 = vector.load %arg6[%c0_9, %c0_10] : memref<8x32xf32, #tpu.memory_space<vmem>>, vector<8x32xf32>
    %9 = vector.extract_strided_slice %5 {offsets = [0, 0], sizes = [8, 128], strides = [1, 1]} : vector<64x128xf32> to vector<8x128xf32>
    %cst_11 = arith.constant dense<0.000000e+00> : vector<8x128xf32>
    %10 = tpu.matmul %7, %6, %cst_11 {dimension_numbers = #tpu.dot_dimension_numbers<[1], [0], [0], [1], [0, 0, 1, 1], [], []>} : vector<8x32xf32>, vector<32x128xf32>, vector<8x128xf32> -> vector<8x128xf32>
    %11 = arith.addf %9, %10 : vector<8x128xf32>
    %12 = arith.negf %11 : vector<8x128xf32>
    %13 = math.exp %12 : vector<8x128xf32>
    %cst_12 = arith.constant 1.000000e+00 : f32
    %14 = vector.broadcast %cst_12 : f32 to vector<8x128xf32>
    %15 = arith.addf %14, %13 : vector<8x128xf32>
    %16 = arith.divf %14, %15 : vector<8x128xf32>
    %17 = vector.extract_strided_slice %16 {offsets = [0, 0], sizes = [8, 32], strides = [1, 1]} : vector<8x128xf32> to vector<8x32xf32>
    %18 = vector.extract_strided_slice %16 {offsets = [0, 32], sizes = [8, 32], strides = [1, 1]} : vector<8x128xf32> to vector<8x32xf32>
    %19 = vector.extract_strided_slice %16 {offsets = [0, 96], sizes = [8, 32], strides = [1, 1]} : vector<8x128xf32> to vector<8x32xf32>
    %20 = vector.extract_strided_slice %11 {offsets = [0, 64], sizes = [8, 32], strides = [1, 1]} : vector<8x128xf32> to vector<8x32xf32>
    %21 = math.tanh %20 : vector<8x32xf32>
    %22 = arith.mulf %18, %8 : vector<8x32xf32>
    %23 = arith.mulf %17, %21 : vector<8x32xf32>
    %24 = arith.addf %22, %23 : vector<8x32xf32>
    %25 = math.tanh %24 : vector<8x32xf32>
    %26 = arith.mulf %19, %25 : vector<8x32xf32>
    %c0_13 = arith.constant 0 : index
    %c0_14 = arith.constant 0 : index
    %27 = vector.load %arg7[%c0_13, %c0_14] : memref<8x256xf32, #tpu.memory_space<vmem>>, vector<8x32xf32>
    tpu.vector_store %arg7[%c0_13, %c0_14], %26 {strides = array<i32>} : memref<8x256xf32, #tpu.memory_space<vmem>>, vector<8x32xf32>,
    %28 = vector.extract_strided_slice %5 {offsets = [8, 0], sizes = [8, 128], strides = [1, 1]} : vector<64x128xf32> to vector<8x128xf32>
    %cst_15 = arith.constant dense<0.000000e+00> : vector<8x128xf32>
    %29 = tpu.matmul %26, %6, %cst_15 {dimension_numbers = #tpu.dot_dimension_numbers<[1], [0], [0], [1], [0, 0, 1, 1], [], []>} : vector<8x32xf32>, vector<32x128xf32>, vector<8x128xf32> -> vector<8x128xf32>
    %30 = arith.addf %28, %29 : vector<8x128xf32>
    %31 = arith.negf %30 : vector<8x128xf32>
    %32 = math.exp %31 : vector<8x128xf32>
    %cst_16 = arith.constant 1.000000e+00 : f32
    %33 = vector.broadcast %cst_16 : f32 to vector<8x128xf32>
    %34 = arith.addf %33, %32 : vector<8x128xf32>
    %35 = arith.divf %33, %34 : vector<8x128xf32>
    %36 = vector.extract_strided_slice %35 {offsets = [0, 0], sizes = [8, 32], strides = [1, 1]} : vector<8x128xf32> to vector<8x32xf32>
    %37 = vector.extract_strided_slice %35 {offsets = [0, 32], sizes = [8, 32], strides = [1, 1]} : vector<8x128xf32> to vector<8x32xf32>
    %38 = vector.extract_strided_slice %35 {offsets = [0, 96], sizes = [8, 32], strides = [1, 1]} : vector<8x128xf32> to vector<8x32xf32>
    %39 = vector.extract_strided_slice %30 {offsets = [0, 64], sizes = [8, 32], strides = [1, 1]} : vector<8x128xf32> to vector<8x32xf32>
    %40 = math.tanh %39 : vector<8x32xf32>
    %41 = arith.mulf %37, %24 : vector<8x32xf32>
    %42 = arith.mulf %36, %40 : vector<8x32xf32>
    %43 = arith.addf %41, %42 : vector<8x32xf32>
    %44 = math.tanh %43 : vector<8x32xf32>
    %45 = arith.mulf %38, %44 : vector<8x32xf32>
    %c0_17 = arith.constant 0 : index
    %c32 = arith.constant 32 : index
    %46 = vector.load %arg7[%c0_17, %c32] : memref<8x256xf32, #tpu.memory_space<vmem>>, vector<8x32xf32>
    tpu.vector_store %arg7[%c0_17, %c32], %45 {strides = array<i32>} : memref<8x256xf32, #tpu.memory_space<vmem>>, vector<8x32xf32>,
    %47 = vector.extract_strided_slice %5 {offsets = [16, 0], sizes = [8, 128], strides = [1, 1]} : vector<64x128xf32> to vector<8x128xf32>
    %cst_18 = arith.constant dense<0.000000e+00> : vector<8x128xf32>
    %48 = tpu.matmul %45, %6, %cst_18 {dimension_numbers = #tpu.dot_dimension_numbers<[1], [0], [0], [1], [0, 0, 1, 1], [], []>} : vector<8x32xf32>, vector<32x128xf32>, vector<8x128xf32> -> vector<8x128xf32>
    %49 = arith.addf %47, %48 : vector<8x128xf32>
    %50 = arith.negf %49 : vector<8x128xf32>
    %51 = math.exp %50 : vector<8x128xf32>
    %cst_19 = arith.constant 1.000000e+00 : f32
    %52 = vector.broadcast %cst_19 : f32 to vector<8x128xf32>
    %53 = arith.addf %52, %51 : vector<8x128xf32>
    %54 = arith.divf %52, %53 : vector<8x128xf32>
    %55 = vector.extract_strided_slice %54 {offsets = [0, 0], sizes = [8, 32], strides = [1, 1]} : vector<8x128xf32> to vector<8x32xf32>
    %56 = vector.extract_strided_slice %54 {offsets = [0, 32], sizes = [8, 32], strides = [1, 1]} : vector<8x128xf32> to vector<8x32xf32>
    %57 = vector.extract_strided_slice %54 {offsets = [0, 96], sizes = [8, 32], strides = [1, 1]} : vector<8x128xf32> to vector<8x32xf32>
    %58 = vector.extract_strided_slice %49 {offsets = [0, 64], sizes = [8, 32], strides = [1, 1]} : vector<8x128xf32> to vector<8x32xf32>
    %59 = math.tanh %58 : vector<8x32xf32>
    %60 = arith.mulf %56, %43 : vector<8x32xf32>
    %61 = arith.mulf %55, %59 : vector<8x32xf32>
    %62 = arith.addf %60, %61 : vector<8x32xf32>
    %63 = math.tanh %62 : vector<8x32xf32>
    %64 = arith.mulf %57, %63 : vector<8x32xf32>
    %c0_20 = arith.constant 0 : index
    %c64 = arith.constant 64 : index
    %65 = vector.load %arg7[%c0_20, %c64] : memref<8x256xf32, #tpu.memory_space<vmem>>, vector<8x32xf32>
    tpu.vector_store %arg7[%c0_20, %c64], %64 {strides = array<i32>} : memref<8x256xf32, #tpu.memory_space<vmem>>, vector<8x32xf32>,
    %66 = vector.extract_strided_slice %5 {offsets = [24, 0], sizes = [8, 128], strides = [1, 1]} : vector<64x128xf32> to vector<8x128xf32>
    %cst_21 = arith.constant dense<0.000000e+00> : vector<8x128xf32>
    %67 = tpu.matmul %64, %6, %cst_21 {dimension_numbers = #tpu.dot_dimension_numbers<[1], [0], [0], [1], [0, 0, 1, 1], [], []>} : vector<8x32xf32>, vector<32x128xf32>, vector<8x128xf32> -> vector<8x128xf32>
    %68 = arith.addf %66, %67 : vector<8x128xf32>
    %69 = arith.negf %68 : vector<8x128xf32>
    %70 = math.exp %69 : vector<8x128xf32>
    %cst_22 = arith.constant 1.000000e+00 : f32
    %71 = vector.broadcast %cst_22 : f32 to vector<8x128xf32>
    %72 = arith.addf %71, %70 : vector<8x128xf32>
    %73 = arith.divf %71, %72 : vector<8x128xf32>
    %74 = vector.extract_strided_slice %73 {offsets = [0, 0], sizes = [8, 32], strides = [1, 1]} : vector<8x128xf32> to vector<8x32xf32>
    %75 = vector.extract_strided_slice %73 {offsets = [0, 32], sizes = [8, 32], strides = [1, 1]} : vector<8x128xf32> to vector<8x32xf32>
    %76 = vector.extract_strided_slice %73 {offsets = [0, 96], sizes = [8, 32], strides = [1, 1]} : vector<8x128xf32> to vector<8x32xf32>
    %77 = vector.extract_strided_slice %68 {offsets = [0, 64], sizes = [8, 32], strides = [1, 1]} : vector<8x128xf32> to vector<8x32xf32>
    %78 = math.tanh %77 : vector<8x32xf32>
    %79 = arith.mulf %75, %62 : vector<8x32xf32>
    %80 = arith.mulf %74, %78 : vector<8x32xf32>
    %81 = arith.addf %79, %80 : vector<8x32xf32>
    %82 = math.tanh %81 : vector<8x32xf32>
    %83 = arith.mulf %76, %82 : vector<8x32xf32>
    %c0_23 = arith.constant 0 : index
    %c96 = arith.constant 96 : index
    %84 = vector.load %arg7[%c0_23, %c96] : memref<8x256xf32, #tpu.memory_space<vmem>>, vector<8x32xf32>
    tpu.vector_store %arg7[%c0_23, %c96], %83 {strides = array<i32>} : memref<8x256xf32, #tpu.memory_space<vmem>>, vector<8x32xf32>,
    %85 = vector.extract_strided_slice %5 {offsets = [32, 0], sizes = [8, 128], strides = [1, 1]} : vector<64x128xf32> to vector<8x128xf32>
    %cst_24 = arith.constant dense<0.000000e+00> : vector<8x128xf32>
    %86 = tpu.matmul %83, %6, %cst_24 {dimension_numbers = #tpu.dot_dimension_numbers<[1], [0], [0], [1], [0, 0, 1, 1], [], []>} : vector<8x32xf32>, vector<32x128xf32>, vector<8x128xf32> -> vector<8x128xf32>
    %87 = arith.addf %85, %86 : vector<8x128xf32>
    %88 = arith.negf %87 : vector<8x128xf32>
    %89 = math.exp %88 : vector<8x128xf32>
    %cst_25 = arith.constant 1.000000e+00 : f32
    %90 = vector.broadcast %cst_25 : f32 to vector<8x128xf32>
    %91 = arith.addf %90, %89 : vector<8x128xf32>
    %92 = arith.divf %90, %91 : vector<8x128xf32>
    %93 = vector.extract_strided_slice %92 {offsets = [0, 0], sizes = [8, 32], strides = [1, 1]} : vector<8x128xf32> to vector<8x32xf32>
    %94 = vector.extract_strided_slice %92 {offsets = [0, 32], sizes = [8, 32], strides = [1, 1]} : vector<8x128xf32> to vector<8x32xf32>
    %95 = vector.extract_strided_slice %92 {offsets = [0, 96], sizes = [8, 32], strides = [1, 1]} : vector<8x128xf32> to vector<8x32xf32>
    %96 = vector.extract_strided_slice %87 {offsets = [0, 64], sizes = [8, 32], strides = [1, 1]} : vector<8x128xf32> to vector<8x32xf32>
    %97 = math.tanh %96 : vector<8x32xf32>
    %98 = arith.mulf %94, %81 : vector<8x32xf32>
    %99 = arith.mulf %93, %97 : vector<8x32xf32>
    %100 = arith.addf %98, %99 : vector<8x32xf32>
    %101 = math.tanh %100 : vector<8x32xf32>
    %102 = arith.mulf %95, %101 : vector<8x32xf32>
    %c0_26 = arith.constant 0 : index
    %c128 = arith.constant 128 : index
    %103 = vector.load %arg7[%c0_26, %c128] : memref<8x256xf32, #tpu.memory_space<vmem>>, vector<8x32xf32>
    tpu.vector_store %arg7[%c0_26, %c128], %102 {strides = array<i32>} : memref<8x256xf32, #tpu.memory_space<vmem>>, vector<8x32xf32>,
    %104 = vector.extract_strided_slice %5 {offsets = [40, 0], sizes = [8, 128], strides = [1, 1]} : vector<64x128xf32> to vector<8x128xf32>
    %cst_27 = arith.constant dense<0.000000e+00> : vector<8x128xf32>
    %105 = tpu.matmul %102, %6, %cst_27 {dimension_numbers = #tpu.dot_dimension_numbers<[1], [0], [0], [1], [0, 0, 1, 1], [], []>} : vector<8x32xf32>, vector<32x128xf32>, vector<8x128xf32> -> vector<8x128xf32>
    %106 = arith.addf %104, %105 : vector<8x128xf32>
    %107 = arith.negf %106 : vector<8x128xf32>
    %108 = math.exp %107 : vector<8x128xf32>
    %cst_28 = arith.constant 1.000000e+00 : f32
    %109 = vector.broadcast %cst_28 : f32 to vector<8x128xf32>
    %110 = arith.addf %109, %108 : vector<8x128xf32>
    %111 = arith.divf %109, %110 : vector<8x128xf32>
    %112 = vector.extract_strided_slice %111 {offsets = [0, 0], sizes = [8, 32], strides = [1, 1]} : vector<8x128xf32> to vector<8x32xf32>
    %113 = vector.extract_strided_slice %111 {offsets = [0, 32], sizes = [8, 32], strides = [1, 1]} : vector<8x128xf32> to vector<8x32xf32>
    %114 = vector.extract_strided_slice %111 {offsets = [0, 96], sizes = [8, 32], strides = [1, 1]} : vector<8x128xf32> to vector<8x32xf32>
    %115 = vector.extract_strided_slice %106 {offsets = [0, 64], sizes = [8, 32], strides = [1, 1]} : vector<8x128xf32> to vector<8x32xf32>
    %116 = math.tanh %115 : vector<8x32xf32>
    %117 = arith.mulf %113, %100 : vector<8x32xf32>
    %118 = arith.mulf %112, %116 : vector<8x32xf32>
    %119 = arith.addf %117, %118 : vector<8x32xf32>
    %120 = math.tanh %119 : vector<8x32xf32>
    %121 = arith.mulf %114, %120 : vector<8x32xf32>
    %c0_29 = arith.constant 0 : index
    %c160 = arith.constant 160 : index
    %122 = vector.load %arg7[%c0_29, %c160] : memref<8x256xf32, #tpu.memory_space<vmem>>, vector<8x32xf32>
    tpu.vector_store %arg7[%c0_29, %c160], %121 {strides = array<i32>} : memref<8x256xf32, #tpu.memory_space<vmem>>, vector<8x32xf32>,
    %123 = vector.extract_strided_slice %5 {offsets = [48, 0], sizes = [8, 128], strides = [1, 1]} : vector<64x128xf32> to vector<8x128xf32>
    %cst_30 = arith.constant dense<0.000000e+00> : vector<8x128xf32>
    %124 = tpu.matmul %121, %6, %cst_30 {dimension_numbers = #tpu.dot_dimension_numbers<[1], [0], [0], [1], [0, 0, 1, 1], [], []>} : vector<8x32xf32>, vector<32x128xf32>, vector<8x128xf32> -> vector<8x128xf32>
    %125 = arith.addf %123, %124 : vector<8x128xf32>
    %126 = arith.negf %125 : vector<8x128xf32>
    %127 = math.exp %126 : vector<8x128xf32>
    %cst_31 = arith.constant 1.000000e+00 : f32
    %128 = vector.broadcast %cst_31 : f32 to vector<8x128xf32>
    %129 = arith.addf %128, %127 : vector<8x128xf32>
    %130 = arith.divf %128, %129 : vector<8x128xf32>
    %131 = vector.extract_strided_slice %130 {offsets = [0, 0], sizes = [8, 32], strides = [1, 1]} : vector<8x128xf32> to vector<8x32xf32>
    %132 = vector.extract_strided_slice %130 {offsets = [0, 32], sizes = [8, 32], strides = [1, 1]} : vector<8x128xf32> to vector<8x32xf32>
    %133 = vector.extract_strided_slice %130 {offsets = [0, 96], sizes = [8, 32], strides = [1, 1]} : vector<8x128xf32> to vector<8x32xf32>
    %134 = vector.extract_strided_slice %125 {offsets = [0, 64], sizes = [8, 32], strides = [1, 1]} : vector<8x128xf32> to vector<8x32xf32>
    %135 = math.tanh %134 : vector<8x32xf32>
    %136 = arith.mulf %132, %119 : vector<8x32xf32>
    %137 = arith.mulf %131, %135 : vector<8x32xf32>
    %138 = arith.addf %136, %137 : vector<8x32xf32>
    %139 = math.tanh %138 : vector<8x32xf32>
    %140 = arith.mulf %133, %139 : vector<8x32xf32>
    %c0_32 = arith.constant 0 : index
    %c192 = arith.constant 192 : index
    %141 = vector.load %arg7[%c0_32, %c192] : memref<8x256xf32, #tpu.memory_space<vmem>>, vector<8x32xf32>
    tpu.vector_store %arg7[%c0_32, %c192], %140 {strides = array<i32>} : memref<8x256xf32, #tpu.memory_space<vmem>>, vector<8x32xf32>,
    %142 = vector.extract_strided_slice %5 {offsets = [56, 0], sizes = [8, 128], strides = [1, 1]} : vector<64x128xf32> to vector<8x128xf32>
    %cst_33 = arith.constant dense<0.000000e+00> : vector<8x128xf32>
    %143 = tpu.matmul %140, %6, %cst_33 {dimension_numbers = #tpu.dot_dimension_numbers<[1], [0], [0], [1], [0, 0, 1, 1], [], []>} : vector<8x32xf32>, vector<32x128xf32>, vector<8x128xf32> -> vector<8x128xf32>
    %144 = arith.addf %142, %143 : vector<8x128xf32>
    %145 = arith.negf %144 : vector<8x128xf32>
    %146 = math.exp %145 : vector<8x128xf32>
    %cst_34 = arith.constant 1.000000e+00 : f32
    %147 = vector.broadcast %cst_34 : f32 to vector<8x128xf32>
    %148 = arith.addf %147, %146 : vector<8x128xf32>
    %149 = arith.divf %147, %148 : vector<8x128xf32>
    %150 = vector.extract_strided_slice %149 {offsets = [0, 0], sizes = [8, 32], strides = [1, 1]} : vector<8x128xf32> to vector<8x32xf32>
    %151 = vector.extract_strided_slice %149 {offsets = [0, 32], sizes = [8, 32], strides = [1, 1]} : vector<8x128xf32> to vector<8x32xf32>
    %152 = vector.extract_strided_slice %149 {offsets = [0, 96], sizes = [8, 32], strides = [1, 1]} : vector<8x128xf32> to vector<8x32xf32>
    %153 = vector.extract_strided_slice %144 {offsets = [0, 64], sizes = [8, 32], strides = [1, 1]} : vector<8x128xf32> to vector<8x32xf32>
    %154 = math.tanh %153 : vector<8x32xf32>
    %155 = arith.mulf %151, %138 : vector<8x32xf32>
    %156 = arith.mulf %150, %154 : vector<8x32xf32>
    %157 = arith.addf %155, %156 : vector<8x32xf32>
    %158 = math.tanh %157 : vector<8x32xf32>
    %159 = arith.mulf %152, %158 : vector<8x32xf32>
    %c0_35 = arith.constant 0 : index
    %c224 = arith.constant 224 : index
    %160 = vector.load %arg7[%c0_35, %c224] : memref<8x256xf32, #tpu.memory_space<vmem>>, vector<8x32xf32>
    tpu.vector_store %arg7[%c0_35, %c224], %159 {strides = array<i32>} : memref<8x256xf32, #tpu.memory_space<vmem>>, vector<8x32xf32>,
    %c0_36 = arith.constant 0 : index
    %c0_37 = arith.constant 0 : index
    %161 = vector.load %arg8[%c0_36, %c0_37] : memref<8x32xf32, #tpu.memory_space<vmem>>, vector<8x32xf32>
    tpu.vector_store %arg8[%c0_36, %c0_37], %159 {strides = array<i32>} : memref<8x32xf32, #tpu.memory_space<vmem>>, vector<8x32xf32>,
    %c0_38 = arith.constant 0 : index
    %c0_39 = arith.constant 0 : index
    %162 = vector.load %arg9[%c0_38, %c0_39] : memref<8x32xf32, #tpu.memory_space<vmem>>, vector<8x32xf32>
    tpu.vector_store %arg9[%c0_38, %c0_39], %157 {strides = array<i32>} : memref<8x32xf32, #tpu.memory_space<vmem>>, vector<8x32xf32>,
    return
  }
  func.func @transform_0(%arg0: i32) -> (i32, i32) {
    %c0_i32 = arith.constant 0 : i32
    %c0_i32_0 = arith.constant 0 : i32
    %c0_i32_1 = arith.constant 0 : i32
    return %c0_i32, %c0_i32_0 : i32, i32
  }
  func.func @transform_1(%arg0: i32) -> (i32, i32) {
    %c0_i32 = arith.constant 0 : i32
    %c0_i32_0 = arith.constant 0 : i32
    %c0_i32_1 = arith.constant 0 : i32
    return %c0_i32, %c0_i32_0 : i32, i32
  }
  func.func @transform_2(%arg0: i32) -> (i32, i32) {
    %c0_i32 = arith.constant 0 : i32
    %c0_i32_0 = arith.constant 0 : i32
    %c0_i32_1 = arith.constant 0 : i32
    return %c0_i32, %c0_i32_0 : i32, i32
  }
  func.func @transform_3(%arg0: i32) -> (i32, i32) {
    %c0_i32 = arith.constant 0 : i32
    %c0_i32_0 = arith.constant 0 : i32
    %c0_i32_1 = arith.constant 0 : i32
    return %c0_i32, %c0_i32_0 : i32, i32
  }
  func.func @transform_4(%arg0: i32) -> (i32, i32) {
    %c0_i32 = arith.constant 0 : i32
    %c0_i32_0 = arith.constant 0 : i32
    %c0_i32_1 = arith.constant 0 : i32
    return %c0_i32, %c0_i32_0 : i32, i32
  }
  func.func @transform_5(%arg0: i32) -> (i32, i32) {
    %c0_i32 = arith.constant 0 : i32
    %c0_i32_0 = arith.constant 0 : i32
    %c0_i32_1 = arith.constant 0 : i32
    return %c0_i32, %c0_i32_0 : i32, i32
  }
  func.func @transform_6(%arg0: i32) -> (i32, i32) {
    %c0_i32 = arith.constant 0 : i32
    %c0_i32_0 = arith.constant 0 : i32
    %c0_i32_1 = arith.constant 0 : i32
    return %c0_i32, %c0_i32_0 : i32, i32
  }
  func.func @transform_7(%arg0: i32) -> (i32, i32) {
    %c0_i32 = arith.constant 0 : i32
    %c0_i32_0 = arith.constant 0 : i32
    %c0_i32_1 = arith.constant 0 : i32
    return %c0_i32, %c0_i32_0 : i32, i32
  }
  func.func @transform_8(%arg0: i32) -> (i32, i32) {
    %c0_i32 = arith.constant 0 : i32
    %c0_i32_0 = arith.constant 0 : i32
    %c0_i32_1 = arith.constant 0 : i32
    return %c0_i32, %c0_i32_0 : i32, i32
  }
}

</mosaic_0001>

<bundles_post_ra>
// kernel: lstm_from_scratch_forward.1
= control target key start
LH: loop header
LB: loop body
LE: loop exit
PB: predicated region body
PF: predicated region fallthrough
CT: control target
= control target key end

     0   :  { %14 = vsyncpa [#allocation3], 0  ;;  %s1897_s0 = inlined_call_operand.hbm [shape: f32[64,32], index: 0, kind: input, shape index: {}]   ;;  %s1898_s1 = inlined_call_operand.hbm [shape: f32[32,128], index: 1, kind: input, shape index: {}]   ;;  %s1899_s2 = inlined_call_operand.hbm [shape: f32[32,128], index: 2, kind: input, shape index: {}]   ;;  %s1900_s3 = inlined_call_operand.vmem [shape: f32[1,128], index: 3, kind: input, shape index: {}]   ;;  %s1901_s4 = inlined_call_operand.vmem [shape: f32[8,32], index: 4, kind: input, shape index: {}]   ;;  %s1902_s5 = inlined_call_operand.hbm [shape: f32[8,32], index: 5, kind: input, shape index: {}]   ;;  %s1903_s6 = inlined_call_operand.vmem [shape: f32[8,256], index: 6, kind: output, shape index: {0}]   ;;  %s1904_s7 = inlined_call_operand.hbm [shape: f32[8,32], index: 7, kind: output, shape index: {1}]   ;;  %s1905_s8 = inlined_call_operand.hbm [shape: f32[8,32], index: 8, kind: output, shape index: {2}]  }
   0x1   :  { %15 = vsyncpa [#allocation6], 0 }
   0x2   :  { %16 = vsyncpa [#allocation9], 0 }
   0x3   :  { %17 = vsyncpa [#allocation4], 0 }
   0x4   :  { %18 = vsyncpa [#allocation12], 0  ;;  %s1569_s27 = smov [#allocation5]   ;;  %s1570_s29 = smov [#allocation2]  }
   0x5   :  { %s36_s28 = sshll.u32 %s1569_s27, 4  ;;  %s24_s30 = sshll.u32 %s1570_s29, 4  ;;  %s37_s28 = int_to_ptr.vmem [resolvable:$true] %s36_s28  ;;  %s1628_s30 = int_to_ptr.vmem [resolvable:$true] %s24_s30 }
   0x6   :  { %s1427_s11 = scalar_lea.hbm %s1898_s1, 512 }
   0x7   :  { %p1428_p0 = scmp.ne.s32.totalorder %s1898_s1, %s1427_s11  ;;  %p1431_p1 = scmp.lt.u32.totalorder %s1427_s11, %s1898_s1 }
   0x9   :  { %p1433_p2 = pnand %p1431_p1, %p1428_p0 }
   0xb   :  { %1436 = shalt.err (!%p1433_p2)
}
   0xc   :  { %s1437_s16 = scalar_lea.vmem %s37_s28, 512  ;;  %p1442_p4 = scmp.lt.s32.totalorder %s37_s28, %s37_s28 }
   0xd   :  { %p1438_p3 = scmp.ne.s32.totalorder %s37_s28, %s1437_s16  ;;  %p1443_p5 = scmp.lt.s32.totalorder %s1437_s16, %s1437_s16 }
   0xf   :  { %p1444_p6 = por %p1443_p5, %p1442_p4 }
  0x11   :  { %p1445_p7 = pnand %p1444_p6, %p1438_p3 }
  0x13   :  { %1448 = shalt.err (!%p1445_p7)
}
  0x14   :  { %s1571_s17 = smov 128   ;;  %s1572_s18 = smov 8  }
  0x15   :  { %42 = dma.hbm_to_vmem [thread:$0]  %s1898_s1, 512, %s37_s28, [#allocation6], %s1571_s17, %s1571_s17, %s1572_s18  }
  0x16   :  { %s1449_s23 = scalar_lea.hbm %s1897_s0, 1024 }
  0x17   :  { %p1450_p8 = scmp.ne.s32.totalorder %s1897_s0, %s1449_s23  ;;  %p1453_p9 = scmp.lt.u32.totalorder %s1449_s23, %s1897_s0 }
  0x19   :  { %p1455_p10 = pnand %p1453_p9, %p1450_p8 }
  0x1b   :  { %1458 = shalt.err (!%p1455_p10)
}
  0x1c   :  { %s1459_s29 = scalar_lea.vmem %s1628_s30, 1024  ;;  %p1464_p12 = scmp.lt.s32.totalorder %s1628_s30, %s1628_s30 }
  0x1d   :  { %p1460_p11 = scmp.ne.s32.totalorder %s1628_s30, %s1459_s29  ;;  %p1465_p13 = scmp.lt.s32.totalorder %s1459_s29, %s1459_s29 }
  0x1f   :  { %p1466_p0 = por %p1465_p13, %p1464_p12 }
  0x21   :  { %p1467_p1 = pnand %p1466_p0, %p1460_p11 }
  0x23   :  { %1470 = shalt.err (!%p1467_p1)
}
  0x24   :  { %30 = dma.hbm_to_vmem [thread:$0]  %s1897_s0, 1024, %s1628_s30, [#allocation3], %s1571_s17, %s1571_s17, %s1572_s18  }
  0x25   :  { %s1573_s9 = smov [#allocation7]   ;;  %s1574_s11 = smov [#allocation8]  }
  0x26   :  { %s48_s10 = sshll.u32 %s1573_s9, 4  ;;  %s65_s12 = sshll.u32 %s1574_s11, 4  ;;  %s49_s10 = int_to_ptr.vmem [resolvable:$true] %s48_s10  ;;  %s66_s12 = int_to_ptr.vmem [resolvable:$true] %s65_s12 }
  0x27   :  { %s1471_s15 = scalar_lea.hbm %s1899_s2, 512 }
  0x28   :  { %p1472_p2 = scmp.ne.s32.totalorder %s1899_s2, %s1471_s15  ;;  %p1475_p3 = scmp.lt.u32.totalorder %s1471_s15, %s1899_s2 }
  0x2a   :  { %p1477_p4 = pnand %p1475_p3, %p1472_p2 }
  0x2c   :  { %1480 = shalt.err (!%p1477_p4)
}
  0x2d   :  { %s1481_s0 = scalar_lea.vmem %s49_s10, 512  ;;  %p1486_p6 = scmp.lt.s32.totalorder %s49_s10, %s49_s10 }
  0x2e   :  { %p1482_p5 = scmp.ne.s32.totalorder %s49_s10, %s1481_s0  ;;  %p1487_p7 = scmp.lt.s32.totalorder %s1481_s0, %s1481_s0 }
  0x30   :  { %p1488_p8 = por %p1487_p7, %p1486_p6 }
  0x32   :  { %p1489_p9 = pnand %p1488_p8, %p1482_p5 }
  0x34   :  { %1492 = shalt.err (!%p1489_p9)
}
  0x35   :  { %54 = dma.hbm_to_vmem [thread:$0]  %s1899_s2, 512, %s49_s10, [#allocation6], %s1571_s17, %s1571_s17, %s1572_s18  }
  0x36   :  { %s1493_s25 = scalar_lea.hbm %s1902_s5, 128 }
  0x37   :  { %p1494_p10 = scmp.ne.s32.totalorder %s1902_s5, %s1493_s25  ;;  %p1497_p11 = scmp.lt.u32.totalorder %s1493_s25, %s1902_s5 }
  0x39   :  { %p1499_p12 = pnand %p1497_p11, %p1494_p10 }
  0x3b   :  { %1502 = shalt.err (!%p1499_p12)
}
  0x3c   :  { %s1503_s28 = scalar_lea.vmem %s66_s12, 128  ;;  %p1508_p0 = scmp.lt.s32.totalorder %s66_s12, %s66_s12 }
  0x3d   :  { %p1504_p13 = scmp.ne.s32.totalorder %s66_s12, %s1503_s28  ;;  %p1509_p1 = scmp.lt.s32.totalorder %s1503_s28, %s1503_s28 }
  0x3f   :  { %p1510_p2 = por %p1509_p1, %p1508_p0 }
  0x41   :  { %p1511_p3 = pnand %p1510_p2, %p1504_p13 }
  0x43   :  { %1514 = shalt.err (!%p1511_p3)
}
  0x44   :  { %68 = dma.hbm_to_vmem [thread:$0]  %s1902_s5, 128, %s66_s12, [#allocation9]  }
  0x45   :  { %1559 = dma.done.wait [#allocation3], 1024  }
  0x46   :  { %1560 = vsyncadd [#allocation3], 4294966272 }
  0x47   :  { %1561 = dma.done.wait [#allocation6], 1024  }
  0x48   :  { %1562 = vsyncadd [#allocation6], 4294966272 }
  0x49   :  { %1563 = dma.done.wait [#allocation9], 128  }
  0x4a   :  { %1564 = vsyncadd [#allocation9], 4294967168  ;;  %v1575_v0 = vmov 0.0|0.0   ;;  %vm1576_vm0 = vmmov 0   ;;  %v1577_v1 = vmov 0.0   ;;  %v89_v2 = vld [vmem:[#allocation5] sm:$0xff] }
  0x4b   :  { %1301 = vmatprep.subr.bf16.mxu1 %v1575_v0  ;;  %1213 = vmatprep.mubr.msk.f32.mxu1 %vm1576_vm0, %v1577_v1  ;;  %v90_v3 = vld [vmem:[#allocation5 + $0x8] sm:$0xff]  ;;  %v230_v4 = vld [vmem:[#allocation7] sm:$0xff]  ;;  %vm100_vm1 = vcmask 261120   ;;  %v91_v7 = vld [vmem:[#allocation5 + $0x10] sm:$0xff]  ;;  %s1578_s10 = smov 64   ;;  %s1579_s11 = smov 32  }
  0x4c   :  { %v1293_v5 = vpack.c.bf16 %v90_v3, %v89_v2  ;;  %v231_v6 = vld [vmem:[#allocation7 + $0x8] sm:$0xff]  ;;  %v92_v8 = vld [vmem:[#allocation5 + $0x18] sm:$0xff]  ;;  %v81_v11 = vld [vmem:[#allocation2] sm:$0xff]  ;;  %s1580_s15 = smov 96   ;;  %vm444_vm2 = vcmask 523520   ;;  %vm549_vm3 = vcmask 785920  }
  0x4d   :  { %v1695_v9 = vpack.c.bf16 %v231_v6, %v230_v4  ;;  %v1297_v10 = vpack.c.bf16 %v92_v8, %v91_v7  ;;  %v232_v12 = vld [vmem:[#allocation7 + $0x10] sm:$0xff]  ;;  %v233_v13 = vld [vmem:[#allocation7 + $0x18] sm:$0xff]  ;;  %1193 = vmatprep.mubr.msk.f32.mxu0 %vm100_vm1, %v81_v11  ;;  %v82_v15 = vld [vmem:[#allocation2 + $0x8] sm:$0xff]  ;;  %vm650_vm4 = vcmask 1048320   ;;  %s1581_s24 = smov [#allocation11]  }
  0x4e   :  { %1294 = vmatprep.subr.bf16.mxu0 %v1293_v5  ;;  %v1699_v14 = vpack.c.bf16 %v233_v13, %v232_v12  ;;  %v234_v16 = vld [vmem:[%s1901_s4] sm:$0xff]  ;;  %v83_v54 = vld [vmem:[#allocation2 + $0x10] sm:$0xff]  ;;  %v84_v55 = vld [vmem:[#allocation2 + $0x18] sm:$0xff]  ;;  %s1091_s25 = sshll.u32 %s1581_s24, 4  ;;  %s1092_s25 = int_to_ptr.vmem [resolvable:$true] %s1091_s25 }
  0x4f   :  { %1296 = vmatpush3.bf16.msra.mxu0 %v1293_v5  ;;  %1303 = vmatpush3.bf16.msra.mxu1 %v1695_v9  ;;  %v1723_v17 = vld [vmem:[%s1900_s3] ss:$0 sm:$0xff]  ;;  %v86_v57 = vld [vmem:[#allocation2 + $0x28] sm:$0xff]  ;;  %v87_v58 = vld [vmem:[#allocation2 + $0x30] sm:$0xff]  ;;  %s1515_s28 = scalar_lea.vmem %s1092_s25, 128  ;;  %p1520_p5 = scmp.lt.s32.totalorder %s1092_s25, %s1092_s25 }
  0x50   :  { %1298 = vmatprep.subr.bf16.mxu0 %v1297_v10  ;;  %1304 = vmatprep.subr.bf16.mxu1 %v1575_v0  ;;  %v235_v25 = vld [vmem:[#allocation8] sm:$0xff]  ;;  %v88_v59 = vld [vmem:[#allocation2 + $0x38] sm:$0xff]  ;;  %p1516_p4 = scmp.ne.s32.totalorder %s1092_s25, %s1515_s28  ;;  %p1521_p6 = scmp.lt.s32.totalorder %s1515_s28, %s1515_s28 }
  0x51   :  { %v85_v56 = vld [vmem:[#allocation2 + $0x20] sm:$0xff] }
  0x52   :  { %p1522_p7 = por %p1521_p6, %p1520_p5 }
  0x53   :  { %1300 = vmatpush3.bf16.msra.mxu0 %v1297_v10  ;;  %1306 = vmatpush3.bf16.msra.mxu1 %v1699_v14 }
  0x54   :  { %1307 = vmatprep.subr.bf16.mxu1 %v1575_v0  ;;  %1313 = vmatprep.subr.bf16.mxu0 %v1575_v0  ;;  %p1523_p8 = pnand %p1522_p7, %p1516_p4 }
  0x56   :  { %1194 = vmatmul.mubr.msk.f32.vlgmr.msra.gmra.mrb[0].mxu0 %vm100_vm1, %v82_v15  ;;  %1214 = vmatmul.mubr.msk.f32.vlgmr.msra.gmra.mrb[0].mxu1 %vm100_vm1, %v234_v16 }
  0x57   :  { %1309 = vmatpush3.bf16.msra.mxu1 %v1695_v9  ;;  %1224 = vmatprep.mubr.msk.f32.mxu1 %vm1576_vm0, %v1577_v1 }
  0x58   :  { %1310 = vmatprep.subr.bf16.mxu1 %v1575_v0  ;;  %1315 = vmatpush3.bf16.msra.mxu0 %v1695_v9 }
  0x59   :  { %1316 = vmatprep.subr.bf16.mxu0 %v1575_v0  ;;  %1196 = vmatprep.mubr.msk.f32.mxu0 %vm100_vm1, %v83_v54 }
  0x5a   :  { %1197 = vmatmul.mubr.msk.f32.gmra.mrb[2].mxu0 %vm100_vm1, %v84_v55 }
  0x5b   :  { %1312 = vmatpush3.bf16.msra.mxu1 %v1699_v14  ;;  %1199 = vmatprep.mubr.msk.f32.mxu0 %vm100_vm1, %v85_v56 }
  0x5c   :  { %1318 = vmatpush3.bf16.msra.mxu0 %v1699_v14  ;;  %1319 = vmatprep.subr.bf16.mxu1 %v1575_v0 }
  0x5d   :  { %1325 = vmatprep.subr.bf16.mxu0 %v1575_v0 }
  0x5e   :  { %1200 = vmatmul.mubr.msk.f32.gmra.mrb[4].mxu0 %vm100_vm1, %v86_v57 }
  0x5f   :  { %1202 = vmatprep.mubr.msk.f32.mxu0 %vm100_vm1, %v87_v58 }
  0x62   :  { %1203 = vmatmul.mubr.msk.f32.gmra.mrb[6].mxu0 %vm100_vm1, %v88_v59 }
  0x63   :  { %1235 = vmatprep.mubr.msk.f32.mxu0 %vm1576_vm0, %v1577_v1 }
 0x129   :  { %v1195_v18 = vpop.f32.mrb[0].mxu0  ;;  %v305_v19 = vpop.f32.mrb[0].mxu1 }
 0x12a   :  { %v191_v20 = vpop.f32.mrb[1].mxu0  ;;  %v1215_v21 = vpop.f32.mrb[1].mxu1  ;;  %v197_v40 = vadd.f32 %v1195_v18, %v1723_v17 }
 0x12b   :  { %v192_v22 = vadd.f32 %v1723_v17, %v191_v20 }
 0x12d   :  { %v309_v23 = vadd.f32 %v305_v19, %v192_v22  ;;  %v1198_v63 = vpop.f32.mrb[2].mxu0 }
 0x12e   :  { %v201_v2 = vpop.f32.mrb[3].mxu0 }
 0x12f   :  { %1363 = vtanh.f32 %v309_v23  ;;  %v1118_v26 = vmul.f32 -1.442695, %v309_v23  ;;  %v202_v8 = vadd.f32 %v1723_v17, %v201_v2 }
 0x131   :  { %1365 = vpow2.f32 %v1118_v26  ;;  %v1758_v3 = vpop.f32.mrb[4].mxu0 }
 0x132   :  { %v1760_v4 = vpop.f32.mrb[5].mxu0 }
 0x135   :  { %v1762_v5 = vpop.f32.mrb[6].mxu0 }
 0x136   :  { %v1764_v6 = vpop.f32.mrb[7].mxu0 }
 0x139   :  { %v1364_v24 = vpop.eup %1363 }
 0x13a   :  { %323 = vrot.lane.b32.xlu0 %v1364_v24, %s1578_s10 }
 0x13b   :  { %v1366_v27 = vpop.eup %1365 }
 0x13c   :  { %v313_v28 = vadd.f32 1.0, %v1366_v27 }
 0x13e   :  { %318 = vrot.lane.b32.xlu0 %v235_v25, %s1579_s11  ;;  %1367 = vrcp.f32 %v313_v28 }
 0x148   :  { %v1368_v29 = vpop.eup %1367 }
 0x1ac   :  { %v324_v30 = vpop.permute.xlu0 %323 }
 0x1ad   :  { %v326_v31 = vmul.f32 %v1368_v29, %v324_v30 }
 0x1af   :  { %328 = vrot.lane.b32.xlu1 %v326_v31, %s1579_s11 }
 0x1b0   :  { %v319_v32 = vpop.permute.xlu0 %318 }
 0x1b1   :  { %v321_v33 = vmul.f32 %v1368_v29, %v319_v32 }
 0x221   :  { %v329_v34 = vpop.permute.xlu1 %328 }
 0x222   :  { %v331_v35 = vadd.f32 %v329_v34, %v321_v33 }
 0x224   :  { %1369 = vtanh.f32 %v331_v35 }
 0x22e   :  { %v1370_v36 = vpop.eup %1369 }
 0x22f   :  { %334 = vrot.lane.b32.xlu1 %v1370_v36, %s1578_s10 }
 0x2a1   :  { %v335_v37 = vpop.permute.xlu1 %334 }
 0x2a2   :  { %v337_v38 = vmul.f32 %v1368_v29, %v335_v37  ;;  %v207_v29 = vadd.f32 %v1198_v63, %v1723_v17 }
 0x2a4   :  { %339 = vrot.lane.b32.xlu0 %v337_v38, %s1579_s11 }
 0x316   :  { %v340_v39 = vpop.permute.xlu0 %339 }
 0x317   :  { %342 = vst.msk [vmem:[%s1903_s6] sm:$0xff] %vm100_vm1, %v340_v39  ;;  %1225 = vmatmul.mubr.msk.f32.vlgmr.msra.gmra.mrb[2].mxu1 %vm100_vm1, %v340_v39 }
 0x318   :  { %1321 = vmatpush3.bf16.msra.mxu1 %v1695_v9  ;;  %1246 = vmatprep.mubr.msk.f32.mxu1 %vm1576_vm0, %v1577_v1 }
 0x319   :  { %1322 = vmatprep.subr.bf16.mxu1 %v1575_v0 }
 0x31c   :  { %1324 = vmatpush3.bf16.msra.mxu1 %v1699_v14 }
 0x31d   :  { %1331 = vmatprep.subr.bf16.mxu1 %v1575_v0 }
 0x3ea   :  { %v411_v41 = vpop.f32.mrb[2].mxu1 }
 0x3eb   :  { %v415_v42 = vadd.f32 %v411_v41, %v197_v40  ;;  %v1226_v43 = vpop.f32.mrb[3].mxu1 }
 0x3ed   :  { %1371 = vtanh.f32 %v415_v42  ;;  %v1120_v45 = vmul.f32 -1.442695, %v415_v42 }
 0x3ef   :  { %1373 = vpow2.f32 %v1120_v45 }
 0x3f7   :  { %v1372_v44 = vpop.eup %1371 }
 0x3f8   :  { %425 = vrot.lane.b32.xlu1 %v1372_v44, %s1578_s10 }
 0x3f9   :  { %v1374_v46 = vpop.eup %1373 }
 0x3fa   :  { %v419_v47 = vadd.f32 1.0, %v1374_v46 }
 0x3fc   :  { %1375 = vrcp.f32 %v419_v47  ;;  %v212_v47 = vadd.f32 %v1723_v17, %v1760_v4 }
 0x406   :  { %v1376_v48 = vpop.eup %1375 }
 0x407   :  { %v423_v51 = vmul.f32 %v1376_v48, %v331_v35 }
 0x46a   :  { %v426_v49 = vpop.permute.xlu1 %425 }
 0x46b   :  { %v428_v50 = vmul.f32 %v1376_v48, %v426_v49 }
 0x46d   :  { %430 = vrot.lane.b32.xlu0 %v428_v50, %s1579_s11 }
 0x4df   :  { %v431_v52 = vpop.permute.xlu0 %430 }
 0x4e0   :  { %v433_v53 = vadd.f32 %v431_v52, %v423_v51 }
 0x4e2   :  { %1377 = vtanh.f32 %v433_v53 }
 0x4ec   :  { %v1378_v60 = vpop.eup %1377 }
 0x4ed   :  { %436 = vrot.lane.b32.xlu1 %v1378_v60, %s1578_s10 }
 0x55f   :  { %v437_v61 = vpop.permute.xlu1 %436 }
 0x560   :  { %v1754_v62 = vmul.f32 %v1376_v48, %v437_v61 }
 0x562   :  { %446 = vrot.lane.b32.xlu0 %v1754_v62, %s1579_s11 }
 0x5d4   :  { %v447_v7 = vpop.permute.xlu0 %446 }
 0x5d5   :  { %1236 = vmatmul.mubr.msk.f32.vlgmr.msra.gmra.mrb[8].mxu0 %vm100_vm1, %v447_v7  ;;  %v217_v7 = vadd.f32 %v1758_v3, %v1723_v17 }
 0x5d6   :  { %1327 = vmatpush3.bf16.msra.mxu0 %v1695_v9  ;;  %1257 = vmatprep.mubr.msk.f32.mxu0 %vm1576_vm0, %v1577_v1 }
 0x5d7   :  { %1328 = vmatprep.subr.bf16.mxu0 %v1575_v0 }
 0x5da   :  { %1330 = vmatpush3.bf16.msra.mxu0 %v1699_v14 }
 0x5db   :  { %1337 = vmatprep.subr.bf16.mxu0 %v1575_v0 }
 0x6a8   :  { %v516_v10 = vpop.f32.mrb[8].mxu0 }
 0x6a9   :  { %v520_v11 = vadd.f32 %v516_v10, %v202_v8  ;;  %v1237_v12 = vpop.f32.mrb[9].mxu0 }
 0x6ab   :  { %1379 = vtanh.f32 %v520_v11  ;;  %v1122_v15 = vmul.f32 -1.442695, %v520_v11 }
 0x6ad   :  { %1381 = vpow2.f32 %v1122_v15 }
 0x6b5   :  { %v1380_v13 = vpop.eup %1379 }
 0x6b6   :  { %530 = vrot.lane.b32.xlu1 %v1380_v13, %s1578_s10 }
 0x6b7   :  { %v1382_v16 = vpop.eup %1381 }
 0x6b8   :  { %v524_v18 = vadd.f32 1.0, %v1382_v16 }
 0x6ba   :  { %1383 = vrcp.f32 %v524_v18 }
 0x6c4   :  { %v1384_v19 = vpop.eup %1383 }
 0x6c5   :  { %v528_v22 = vmul.f32 %v1384_v19, %v433_v53 }
 0x728   :  { %v531_v20 = vpop.permute.xlu1 %530 }
 0x729   :  { %v533_v21 = vmul.f32 %v1384_v19, %v531_v20 }
 0x72b   :  { %535 = vrot.lane.b32.xlu0 %v533_v21, %s1579_s11 }
 0x79d   :  { %v536_v23 = vpop.permute.xlu0 %535 }
 0x79e   :  { %v538_v24 = vadd.f32 %v536_v23, %v528_v22  ;;  %v222_v23 = vadd.f32 %v1723_v17, %v1764_v6 }
 0x7a0   :  { %1385 = vtanh.f32 %v538_v24 }
 0x7aa   :  { %v1386_v25 = vpop.eup %1385 }
 0x7ab   :  { %541 = vrot.lane.b32.xlu1 %v1386_v25, %s1578_s10 }
 0x81d   :  { %v542_v26 = vpop.permute.xlu1 %541 }
 0x81e   :  { %v1777_v27 = vmul.f32 %v1384_v19, %v542_v26 }
 0x820   :  { %551 = vrot.lane.b32.xlu0 %v1777_v27, %s1579_s11 }
 0x892   :  { %v552_v28 = vpop.permute.xlu0 %551 }
 0x893   :  { %1247 = vmatmul.mubr.msk.f32.vlgmr.msra.gmra.mrb[4].mxu1 %vm100_vm1, %v552_v28 }
 0x894   :  { %1333 = vmatpush3.bf16.msra.mxu1 %v1695_v9  ;;  %1268 = vmatprep.mubr.msk.f32.mxu1 %vm1576_vm0, %v1577_v1 }
 0x895   :  { %1334 = vmatprep.subr.bf16.mxu1 %v1575_v0 }
 0x898   :  { %1336 = vmatpush3.bf16.msra.mxu1 %v1699_v14 }
 0x899   :  { %1343 = vmatprep.subr.bf16.mxu1 %v1575_v0 }
 0x966   :  { %v621_v30 = vpop.f32.mrb[4].mxu1 }
 0x967   :  { %v625_v31 = vadd.f32 %v621_v30, %v207_v29  ;;  %v1248_v32 = vpop.f32.mrb[5].mxu1 }
 0x969   :  { %1387 = vtanh.f32 %v625_v31  ;;  %v1124_v34 = vmul.f32 -1.442695, %v625_v31 }
 0x96b   :  { %1389 = vpow2.f32 %v1124_v34 }
 0x973   :  { %v1388_v33 = vpop.eup %1387 }
 0x974   :  { %635 = vrot.lane.b32.xlu1 %v1388_v33, %s1578_s10 }
 0x975   :  { %v1390_v35 = vpop.eup %1389 }
 0x976   :  { %v629_v36 = vadd.f32 1.0, %v1390_v35 }
 0x978   :  { %1391 = vrcp.f32 %v629_v36 }
 0x982   :  { %v1392_v37 = vpop.eup %1391 }
 0x983   :  { %v633_v40 = vmul.f32 %v1392_v37, %v538_v24 }
 0x9e6   :  { %v636_v38 = vpop.permute.xlu1 %635 }
 0x9e7   :  { %v638_v39 = vmul.f32 %v1392_v37, %v636_v38 }
 0x9e9   :  { %640 = vrot.lane.b32.xlu0 %v638_v39, %s1579_s11 }
 0xa5b   :  { %v641_v41 = vpop.permute.xlu0 %640 }
 0xa5c   :  { %v643_v42 = vadd.f32 %v641_v41, %v633_v40  ;;  %v227_v41 = vadd.f32 %v1762_v5, %v1723_v17 }
 0xa5e   :  { %1393 = vtanh.f32 %v643_v42 }
 0xa68   :  { %v1394_v43 = vpop.eup %1393 }
 0xa69   :  { %646 = vrot.lane.b32.xlu1 %v1394_v43, %s1578_s10 }
 0xadb   :  { %v647_v44 = vpop.permute.xlu1 %646 }
 0xadc   :  { %v1792_v45 = vmul.f32 %v1392_v37, %v647_v44 }
 0xade   :  { %653 = vrot.lane.b32.xlu0 %v1792_v45, %s1579_s11 }
 0xb50   :  { %v654_v46 = vpop.permute.xlu0 %653 }
 0xb51   :  { %1258 = vmatmul.mubr.msk.f32.vlgmr.msra.gmra.mrb[10].mxu0 %vm100_vm1, %v654_v46 }
 0xb52   :  { %1339 = vmatpush3.bf16.msra.mxu0 %v1695_v9  ;;  %1279 = vmatprep.mubr.msk.f32.mxu0 %vm1576_vm0, %v1577_v1 }
 0xb53   :  { %1340 = vmatprep.subr.bf16.mxu0 %v1575_v0 }
 0xb56   :  { %1342 = vmatpush3.bf16.msra.mxu0 %v1699_v14 }
 0xc24   :  { %v723_v48 = vpop.f32.mrb[10].mxu0 }
 0xc25   :  { %v727_v49 = vadd.f32 %v723_v48, %v212_v47  ;;  %v1259_v50 = vpop.f32.mrb[11].mxu0 }
 0xc27   :  { %1395 = vtanh.f32 %v727_v49  ;;  %v1126_v52 = vmul.f32 -1.442695, %v727_v49 }
 0xc29   :  { %1397 = vpow2.f32 %v1126_v52 }
 0xc31   :  { %v1396_v51 = vpop.eup %1395 }
 0xc32   :  { %737 = vrot.lane.b32.xlu1 %v1396_v51, %s1578_s10 }
 0xc33   :  { %v1398_v53 = vpop.eup %1397 }
 0xc34   :  { %v731_v54 = vadd.f32 1.0, %v1398_v53 }
 0xc36   :  { %1399 = vrcp.f32 %v731_v54 }
 0xc40   :  { %v1400_v55 = vpop.eup %1399 }
 0xc41   :  { %v735_v58 = vmul.f32 %v1400_v55, %v643_v42 }
 0xca4   :  { %v738_v56 = vpop.permute.xlu1 %737 }
 0xca5   :  { %v740_v57 = vmul.f32 %v1400_v55, %v738_v56 }
 0xca7   :  { %742 = vrot.lane.b32.xlu0 %v740_v57, %s1579_s11 }
 0xd19   :  { %v743_v59 = vpop.permute.xlu0 %742 }
 0xd1a   :  { %v745_v60 = vadd.f32 %v743_v59, %v735_v58 }
 0xd1c   :  { %1401 = vtanh.f32 %v745_v60 }
 0xd26   :  { %v1402_v61 = vpop.eup %1401 }
 0xd27   :  { %748 = vrot.lane.b32.xlu1 %v1402_v61, %s1578_s10 }
 0xd99   :  { %v749_v63 = vpop.permute.xlu1 %748 }
 0xd9a   :  { %v751_v2 = vmul.f32 %v1400_v55, %v749_v63 }
 0xd9c   :  { %753 = vrot.lane.b32.xlu0 %v751_v2, %s1579_s11 }
 0xe0e   :  { %v754_v4 = vpop.permute.xlu0 %753 }
 0xe0f   :  { %756 = vst.msk [vmem:[%s1903_s6 + $0x8] sm:$0xff] %vm100_vm1, %v754_v4  ;;  %1269 = vmatmul.mubr.msk.f32.vlgmr.msra.gmra.mrb[6].mxu1 %vm100_vm1, %v754_v4 }
 0xe10   :  { %1345 = vmatpush3.bf16.msra.mxu1 %v1695_v9  ;;  %1290 = vmatprep.mubr.msk.f32.mxu1 %vm1576_vm0, %v1577_v1 }
 0xe11   :  { %1346 = vmatprep.subr.bf16.mxu1 %v1575_v0 }
 0xe14   :  { %1348 = vmatpush3.bf16.msra.mxu1 %v1699_v14 }
 0xee2   :  { %v825_v8 = vpop.f32.mrb[6].mxu1 }
 0xee3   :  { %v829_v10 = vadd.f32 %v825_v8, %v217_v7  ;;  %v1270_v11 = vpop.f32.mrb[7].mxu1 }
 0xee5   :  { %1403 = vtanh.f32 %v829_v10  ;;  %v1128_v13 = vmul.f32 -1.442695, %v829_v10 }
 0xee7   :  { %1405 = vpow2.f32 %v1128_v13 }
 0xeef   :  { %v1404_v12 = vpop.eup %1403 }
 0xef0   :  { %839 = vrot.lane.b32.xlu1 %v1404_v12, %s1578_s10 }
 0xef1   :  { %v1406_v9 = vpop.eup %1405 }
 0xef2   :  { %v833_v15 = vadd.f32 1.0, %v1406_v9 }
 0xef4   :  { %1407 = vrcp.f32 %v833_v15 }
 0xefe   :  { %v1408_v1 = vpop.eup %1407 }
 0xeff   :  { %v837_v14 = vmul.f32 %v1408_v1, %v745_v60 }
 0xf62   :  { %v840_v16 = vpop.permute.xlu1 %839 }
 0xf63   :  { %v842_v0 = vmul.f32 %v1408_v1, %v840_v16 }
 0xf65   :  { %844 = vrot.lane.b32.xlu0 %v842_v0, %s1579_s11 }
 0xfd7   :  { %v845_v18 = vpop.permute.xlu0 %844 }
 0xfd8   :  { %v847_v3 = vadd.f32 %v845_v18, %v837_v14 }
 0xfda   :  { %1409 = vtanh.f32 %v847_v3 }
 0xfe4   :  { %v1410_v19 = vpop.eup %1409 }
 0xfe5   :  { %850 = vrot.lane.b32.xlu1 %v1410_v19, %s1578_s10 }
0x1057   :  { %v851_v20 = vpop.permute.xlu1 %850 }
0x1058   :  { %v1823_v21 = vmul.f32 %v1408_v1, %v851_v20 }
0x105a   :  { %859 = vrot.lane.b32.xlu0 %v1823_v21, %s1579_s11 }
0x10cc   :  { %v860_v22 = vpop.permute.xlu0 %859 }
0x10cd   :  { %1280 = vmatmul.mubr.msk.f32.vlgmr.msra.gmra.mrb[12].mxu0 %vm100_vm1, %v860_v22 }
0x11a0   :  { %v929_v24 = vpop.f32.mrb[12].mxu0 }
0x11a1   :  { %v933_v25 = vadd.f32 %v929_v24, %v222_v23  ;;  %v1281_v26 = vpop.f32.mrb[13].mxu0 }
0x11a3   :  { %1411 = vtanh.f32 %v933_v25  ;;  %v1130_v29 = vmul.f32 -1.442695, %v933_v25 }
0x11a5   :  { %1413 = vpow2.f32 %v1130_v29 }
0x11ad   :  { %v1412_v28 = vpop.eup %1411 }
0x11ae   :  { %943 = vrot.lane.b32.xlu1 %v1412_v28, %s1578_s10 }
0x11af   :  { %v1414_v30 = vpop.eup %1413 }
0x11b0   :  { %v937_v31 = vadd.f32 1.0, %v1414_v30 }
0x11b2   :  { %1415 = vrcp.f32 %v937_v31 }
0x11bc   :  { %v1416_v32 = vpop.eup %1415 }
0x11bd   :  { %v941_v35 = vmul.f32 %v1416_v32, %v847_v3 }
0x1220   :  { %v944_v33 = vpop.permute.xlu1 %943 }
0x1221   :  { %v946_v34 = vmul.f32 %v1416_v32, %v944_v33 }
0x1223   :  { %948 = vrot.lane.b32.xlu0 %v946_v34, %s1579_s11 }
0x1295   :  { %v949_v36 = vpop.permute.xlu0 %948 }
0x1296   :  { %v951_v6 = vadd.f32 %v949_v36, %v941_v35 }
0x1298   :  { %1417 = vtanh.f32 %v951_v6 }
0x12a2   :  { %v1418_v37 = vpop.eup %1417 }
0x12a3   :  { %954 = vrot.lane.b32.xlu1 %v1418_v37, %s1578_s10 }
0x1315   :  { %v955_v38 = vpop.permute.xlu1 %954 }
0x1316   :  { %v957_v39 = vmul.f32 %v1416_v32, %v955_v38 }
0x1318   :  { %963 = vrot.lane.b32.xlu0 %v957_v39, %s1579_s11 }
0x138a   :  { %v964_v40 = vpop.permute.xlu0 %963 }
0x138b   :  { %1291 = vmatmul.mubr.msk.f32.vlgmr.msra.gmra.mrb[8].mxu1 %vm100_vm1, %v964_v40 }
0x145e   :  { %v1033_v42 = vpop.f32.mrb[8].mxu1 }
0x145f   :  { %v1037_v43 = vadd.f32 %v1033_v42, %v227_v41  ;;  %v1292_v44 = vpop.f32.mrb[9].mxu1 }
0x1461   :  { %1419 = vtanh.f32 %v1037_v43  ;;  %v1132_v47 = vmul.f32 -1.442695, %v1037_v43 }
0x1463   :  { %1421 = vpow2.f32 %v1132_v47 }
0x146b   :  { %v1420_v46 = vpop.eup %1419 }
0x146c   :  { %1047 = vrot.lane.b32.xlu1 %v1420_v46, %s1578_s10 }
0x146d   :  { %v1422_v48 = vpop.eup %1421 }
0x146e   :  { %v1041_v49 = vadd.f32 1.0, %v1422_v48 }
0x1470   :  { %1423 = vrcp.f32 %v1041_v49 }
0x147a   :  { %v1424_v50 = vpop.eup %1423 }
0x147b   :  { %v1045_v17 = vmul.f32 %v1424_v50, %v951_v6 }
0x14de   :  { %v1048_v51 = vpop.permute.xlu1 %1047 }
0x14df   :  { %v1050_v52 = vmul.f32 %v1424_v50, %v1048_v51 }
0x14e1   :  { %1052 = vrot.lane.b32.xlu0 %v1050_v52, %s1579_s11 }
0x14e5   :  { %441 = vrot.lane.b32.xlu0 %v1754_v62, %s1578_s10 }
0x14e9   :  { %546 = vrot.lane.b32.xlu0 %v1777_v27, %s1580_s15 }
0x1553   :  { %v1053_v5 = vpop.permute.xlu0 %1052 }
0x1554   :  { %v1055_v53 = vadd.f32 %v1053_v5, %v1045_v17 }
0x1556   :  { %1425 = vtanh.f32 %v1055_v53 }
0x1557   :  { %v442_v54 = vpop.permute.xlu0 %441 }
0x1558   :  { %445 = vst.msk [vmem:[%s1903_s6] sm:$0xff] %vm444_vm2, %v442_v54 }
0x155b   :  { %v547_v55 = vpop.permute.xlu0 %546 }
0x155c   :  { %550 = vst.msk [vmem:[%s1903_s6] sm:$0xff] %vm549_vm3, %v547_v55 }
0x155d   :  { %651 = vst.msk [vmem:[%s1903_s6] sm:$0xff] %vm650_vm4, %v1792_v45 }
0x1560   :  { %v1426_v62 = vpop.eup %1425 }
0x1561   :  { %1058 = vrot.lane.b32.xlu1 %v1426_v62, %s1578_s10 }
0x1565   :  { %855 = vrot.lane.b32.xlu1 %v1823_v21, %s1578_s10 }
0x1569   :  { %959 = vrot.lane.b32.xlu1 %v957_v39, %s1580_s15 }
0x156d   :  { %1069 = vrot.lane.b32.xlu1 %v1055_v53, %s1580_s15 }
0x15d3   :  { %v1059_v27 = vpop.permute.xlu1 %1058 }
0x15d4   :  { %v1061_v56 = vmul.f32 %v1424_v50, %v1059_v27 }
0x15d6   :  { %1064 = vrot.lane.b32.xlu0 %v1061_v56, %s1579_s11 }
0x15d7   :  { %v856_v57 = vpop.permute.xlu1 %855 }
0x15d8   :  { %858 = vst.msk [vmem:[%s1903_s6 + $0x8] sm:$0xff] %vm444_vm2, %v856_v57 }
0x15db   :  { %v960_v58 = vpop.permute.xlu1 %959 }
0x15dc   :  { %962 = vst.msk [vmem:[%s1903_s6 + $0x8] sm:$0xff] %vm549_vm3, %v960_v58 }
0x15dd   :  { %1062 = vst.msk [vmem:[%s1903_s6 + $0x8] sm:$0xff] %vm650_vm4, %v1061_v56 }
0x15df   :  { %v1070_v45 = vpop.permute.xlu1 %1069 }
0x15e0   :  { %1072 = vst.msk [vmem:[#allocation11] sm:$0xff] %vm100_vm1, %v1070_v45 }
0x15e1   :  { %1526 = shalt.err (!%p1523_p8)
}
0x15e2   :  { %s1527_s5 = scalar_lea.hbm %s1905_s8, 128 }
0x15e3   :  { %p1528_p9 = scmp.ne.s32.totalorder %s1905_s8, %s1527_s5  ;;  %p1531_p10 = scmp.lt.u32.totalorder %s1527_s5, %s1905_s8 }
0x15e5   :  { %p1533_p11 = pnand %p1531_p10, %p1528_p9 }
0x15e7   :  { %1536 = shalt.err (!%p1533_p11)
}
0x15e8   :  { %1094 = dma.vmem_to_hbm [thread:$0]  %s1092_s25, 128, %s1905_s8, [#allocation12]  }
0x15e9   :  { %s1582_s3 = smov [#allocation10]  }
0x15ea   :  { %s1081_s12 = sshll.u32 %s1582_s3, 4  ;;  %s1082_s12 = int_to_ptr.vmem [resolvable:$true] %s1081_s12 }
0x15eb   :  { %s1537_s13 = scalar_lea.vmem %s1082_s12, 128  ;;  %p1542_p13 = scmp.lt.s32.totalorder %s1082_s12, %s1082_s12 }
0x15ec   :  { %p1538_p12 = scmp.ne.s32.totalorder %s1082_s12, %s1537_s13  ;;  %p1543_p0 = scmp.lt.s32.totalorder %s1537_s13, %s1537_s13 }
0x15ee   :  { %p1544_p1 = por %p1543_p0, %p1542_p13 }
0x15f0   :  { %p1545_p2 = pnand %p1544_p1, %p1538_p12 }
0x1648   :  { %v1065_v59 = vpop.permute.xlu0 %1064 }
0x1649   :  { %1067 = vst.msk [vmem:[#allocation10] sm:$0xff] %vm100_vm1, %v1065_v59 }
0x164a   :  { %1548 = shalt.err (!%p1545_p2)
}
0x164b   :  { %s1549_s16 = scalar_lea.hbm %s1904_s7, 128 }
0x164c   :  { %p1550_p3 = scmp.ne.s32.totalorder %s1904_s7, %s1549_s16  ;;  %p1553_p4 = scmp.lt.u32.totalorder %s1549_s16, %s1904_s7 }
0x164e   :  { %p1555_p5 = pnand %p1553_p4, %p1550_p3 }
0x1650   :  { %1558 = shalt.err (!%p1555_p5)
}
0x1651   :  { %1084 = dma.vmem_to_hbm [thread:$0]  %s1082_s12, 128, %s1904_s7, [#allocation4]  }
0x1652   :  { %1565 = dma.done.wait [#allocation4], 128  }
0x1653   :  { %1566 = vsyncadd [#allocation4], 4294967168 }
0x1654   :  { %1567 = dma.done.wait [#allocation12], 128  }
0x1655   :  { %1568 = vsyncadd [#allocation12], 4294967168 }
0x1656   :  { %1103 = vsyncpa [#allocation3], 1 }
0x1657   :  { %1104 = vsyncpa [#allocation6], 1 }
0x1658   :  { %1105 = vsyncpa [#allocation9], 1 }
0x1659   :  { %1106 = vsyncpa [#allocation4], 1 }
0x165a   :  { %1107 = vsyncpa [#allocation12], 1 }

</bundles_post_ra>
